<compile_context>
chip_gen: v6e
topology: v6e:2x2x1
jax: 0.10.0
libtpu: 0.0.40
codegen_flags: <defaults>
</compile_context>

<pallas_src>
import jax
import jax.numpy as jnp
from jax.experimental import pallas as pl
from jax.experimental.pallas import tpu as pltpu


# ---------------------------------------------------------------------------
# Helpers
# ---------------------------------------------------------------------------
def _round_up(x, m):
    return ((x + m - 1) // m) * m


def _padded_vmem_bytes(shape, dtype):
    """Bytes a 2-D array occupies in (8/16, 128)-tiled VMEM."""
    itemsize = jnp.dtype(dtype).itemsize
    sublane = 8 * max(1, 4 // itemsize)          # 8 for f32, 16 for bf16
    r, c = shape[-2], shape[-1]
    return _round_up(r, sublane) * _round_up(c, 128) * itemsize


def _apply_activation(h, name):
    if name == "relu":
        return jnp.maximum(h, 0.0)
    if name == "leaky_relu":
        return jnp.where(h > 0, h, 0.01 * h)
    if name == "tanh":
        return jnp.tanh(h)
    if name == "sigmoid":
        return jax.nn.sigmoid(h)
    if name == "linear":
        return h
    raise ValueError(f"unsupported activation: {name}")


# ---------------------------------------------------------------------------
# ngram helper (plain JAX) — used only by the pure-JAX reference.
# ---------------------------------------------------------------------------
def ngram_jax(x, context_size):
    seq_len, batch, d = x.shape
    pad = jnp.zeros((1, 1, d), dtype=x.dtype)
    shifted_list = []
    for i in range(context_size):
        offset = i - context_size // 2
        if offset < 0:
            top = jnp.tile(pad, (-offset, batch, 1))
            shifted = jnp.concatenate([top, x[: seq_len + offset]], axis=0)
        elif offset > 0:
            bottom = jnp.tile(pad, (offset, batch, 1))
            shifted = jnp.concatenate([x[offset:], bottom], axis=0)
        else:
            shifted = x
        shifted_list.append(shifted)
    return jnp.concatenate(shifted_list, axis=-1)


# ---------------------------------------------------------------------------
# Pallas kernel: fused ngram + MLP over one row tile.
# ---------------------------------------------------------------------------
def _make_ngram_mlp_kernel(activations, context_size, batch_size, block_m,
                           compute_dtype):
    n_layers = len(activations)

    def kernel(x_ref, *refs):
        out_ref = refs[-1]
        param_refs = refs[:-1]          # w0, b0, w1, b1, ..., w_last^T, b_last

        r0 = pl.multiple_of(pl.program_id(0) * block_m, block_m)

        # Fused ngram: context_size shifted row windows of the resident padded
        # input, lane-concatenated into (block_m, ctx*feat).  Row r of the ngram
        # for context offset j is padded-input row r + j*B.
        # NOTE: the j*batch window starts are not always 8-aligned (batch=2/4);
        # left as-is per review (only act if the vld slot is the measured binder).
        parts = [
            x_ref[pl.ds(r0 + j * batch_size, block_m), :]     # (block_m, feat)
            for j in range(context_size)
        ]
        h = jnp.concatenate(parts, axis=-1) if context_size > 1 else parts[0]

        # Hidden layers: single K=ctx*feat dot for layer 0, MXU + f32 accumulation.
        for l in range(n_layers - 1):
            w = param_refs[2 * l][...]                         # compute_dtype
            b = param_refs[2 * l + 1][...]                     # f32
            z = jnp.dot(h, w, preferred_element_type=jnp.float32) + b
            a = _apply_activation(z, activations[l])
            # Keep the last hidden activation in f32 for the VPU final layer.
            h = a.astype(compute_dtype) if l < n_layers - 2 else a

        # Last layer (in -> 1) on the VPU: broadcast mul + lane reduce.
        w_last = param_refs[-2][...]                           # (1, hidden) f32
        b_last = param_refs[-1][...]                           # (1, 1)      f32
        y = jnp.sum(h.astype(jnp.float32) * w_last, axis=-1, keepdims=True)
        y = _apply_activation(y + b_last, activations[-1])     # (block_m, 1)
        # Lane-dense store: (1, block_m) row instead of a 1-lane-wide column.
        out_ref[...] = y.T.astype(out_ref.dtype)

    return kernel


# ---------------------------------------------------------------------------
# Wrapper: forward pass of NGramFullyConnectedNetwork.
# ---------------------------------------------------------------------------
def ngram_fc_forward(state, action, params, activations, context_size, *,
                     max_block_m=1024, compute_dtype=jnp.bfloat16):
    """state/action: (seq_len, batch, dim).  Returns (batch, seq_len)."""
    assert context_size % 2 == 1, f"Context size is not odd: {context_size}"
    x = jnp.concatenate([state, action], axis=-1)            # (S, B, D)
    seq_len, batch, feat = x.shape
    halo = context_size // 2
    n_rows = seq_len * batch

    # Row tiling: single block only for tiny problems; otherwise >= 2 blocks so
    # both v7x TensorCores get work, tile size up to max_block_m (128-multiple).
    if n_rows <= 128:
        block_m = _round_up(max(n_rows, 8), 8)
        num_blocks = 1
    else:
        block_m = min(_round_up(max_block_m, 128),
                      _round_up(pl.cdiv(n_rows, 2), 128))
        num_blocks = pl.cdiv(n_rows, block_m)
    n_pad = num_blocks * block_m

    # Flatten to 2D, cast to compute_dtype once (wrapper-side), and zero-pad:
    # halo rows (ngram zero padding) at the top, halo + tail-padding at the bottom.
    x2 = x.reshape(n_rows, feat).astype(compute_dtype)
    xp2 = jnp.concatenate(
        [jnp.zeros((halo * batch, feat), compute_dtype),
         x2,
         jnp.zeros((n_pad - n_rows + halo * batch, feat), compute_dtype)],
        axis=0)                                              # (n_pad + 2*halo*B, D)

    # Params: hidden layers (in,out)/(1,out); last-layer weight transposed to
    # (1, in) so the kernel's VPU path reads it lane-major.  Hidden weights are
    # pre-cast to compute_dtype; biases and last layer stay f32.
    n_layers = len(params)
    assert len(activations) == n_layers
    resident = pl.BlockSpec(memory_space=pltpu.MemorySpace.VMEM)  # single-buffered
    flat_params = []
    in_specs = [resident]                                    # resident input
    for li, (w, b) in enumerate(params):
        b = b.astype(jnp.float32).reshape(1, -1)
        if li == n_layers - 1:
            w = w.astype(jnp.float32).T                      # (1, in)
        else:
            w = w.astype(compute_dtype)
        flat_params.extend([w, b])
        in_specs.extend([resident, resident])

    out_specs = pl.BlockSpec((1, block_m), lambda i: (0, i))

    # VMEM budget: single-buffered residents + double-buffered output blocks
    # + working headroom for one tile's activations; clamped to physical VMEM.
    widths = [context_size * feat] + [w.shape[1] for (w, _) in params]
    vmem_need = _padded_vmem_bytes(xp2.shape, compute_dtype)
    vmem_need += sum(_padded_vmem_bytes(p.shape, p.dtype) for p in flat_params)
    vmem_need += 2 * _padded_vmem_bytes((1, block_m), jnp.float32)
    vmem_need += 6 * block_m * _round_up(max(widths), 128) * 4
    try:
        vmem_cap = int(pltpu.get_tpu_info().vmem_capacity_bytes)
    except Exception:
        vmem_cap = 64 * 1024 * 1024                          # conservative fallback
    vmem_limit = int(min(max(vmem_need, 16 * 1024 * 1024), int(0.9 * vmem_cap)))

    kernel = _make_ngram_mlp_kernel(activations, context_size, batch, block_m,
                                    compute_dtype)

    y = pl.pallas_call(
        kernel,
        out_shape=jax.ShapeDtypeStruct((1, n_pad), jnp.float32),
        grid_spec=pltpu.PrefetchScalarGridSpec(
            num_scalar_prefetch=0,
            grid=(num_blocks,),
            in_specs=in_specs,
            out_specs=out_specs,
        ),
        compiler_params=pltpu.CompilerParams(
            dimension_semantics=("parallel",),
            vmem_limit_bytes=vmem_limit,
        ),
    )(xp2, *flat_params)

    # (1, n_pad) -> drop padding -> (S, B) -> transpose(0,1) like the module.
    return y[0, :n_rows].reshape(seq_len, batch).T


# ---------------------------------------------------------------------------
# Pure-JAX reference (for correctness check).
# ---------------------------------------------------------------------------
def reference_forward(state, action, params, activations, context_size):
    x = jnp.concatenate([state, action], axis=-1)
    ng = ngram_jax(x, context_size)
    h = ng.astype(jnp.float32)
    for (w, b), act in zip(params, activations):
        h = h @ w + b
        h = _apply_activation(h, act)
    return jnp.transpose(h, (1, 0, 2))[..., 0]


# ---------------------------------------------------------------------------
# Deterministic parameter init (PyTorch Linear-style uniform ±1/sqrt(fan_in)).
# ---------------------------------------------------------------------------
def init_fc_params(key, layer_sizes):
    params = []
    for in_dim, out_dim in zip(layer_sizes[:-1], layer_sizes[1:]):
        key, kw, kb = jax.random.split(key, 3)
        bound = 1.0 / (in_dim ** 0.5)
        w = jax.random.uniform(kw, (in_dim, out_dim), jnp.float32, -bound, bound)
        b = jax.random.uniform(kb, (1, out_dim), jnp.float32, -bound, bound)
        params.append((w, b))
    return params


if __name__ == "__main__":
    # Module config.
    state_dim, action_dim = 4, 4
    sizes = [32, 16]
    activations = ["relu", "relu"]
    last_layer_activation = "sigmoid"
    context_size = 3  # must be odd

    feat_dim = state_dim + action_dim
    layer_sizes = [feat_dim * context_size] + sizes + [1]
    all_acts = activations + [last_layer_activation]

    key = jax.random.PRNGKey(0)
    k1, k2, k3, k4, k5 = jax.random.split(key, 5)
    params = init_fc_params(k3, layer_sizes)

    # --- Small case (single grid step), exact f32 path ---
    seq_len, batch = 8, 2
    state = jax.random.normal(k1, (seq_len, batch, state_dim), jnp.float32)
    action = jax.random.normal(k2, (seq_len, batch, action_dim), jnp.float32)
    out = jax.block_until_ready(
        ngram_fc_forward(state, action, params, all_acts, context_size,
                         compute_dtype=jnp.float32))
    ref = jax.block_until_ready(
        reference_forward(state, action, params, all_acts, context_size))
    assert out.shape == (batch, seq_len), out.shape
    assert jnp.allclose(out, ref, atol=5e-5, rtol=5e-5), (out, ref)

    # --- Larger case (two tiles + padded tail, both TCs on v7x), f32 ---
    seq_len2, batch2 = 200, 4
    state2 = jax.random.normal(k4, (seq_len2, batch2, state_dim), jnp.float32)
    action2 = jax.random.normal(k5, (seq_len2, batch2, action_dim), jnp.float32)
    out2 = jax.block_until_ready(
        ngram_fc_forward(state2, action2, params, all_acts, context_size,
                         compute_dtype=jnp.float32))
    ref2 = jax.block_until_ready(
        reference_forward(state2, action2, params, all_acts, context_size))
    assert out2.shape == (batch2, seq_len2), out2.shape
    assert jnp.allclose(out2, ref2, atol=5e-5, rtol=5e-5)

    # --- Same larger case with the default bf16 compute path (loose tolerance) ---
    out3 = jax.block_until_ready(
        ngram_fc_forward(state2, action2, params, all_acts, context_size))
    assert out3.shape == (batch2, seq_len2), out3.shape
    assert jnp.allclose(out3, ref2, atol=2e-2, rtol=2e-2)

    print("KERNEL_OK")
</pallas_src>

<mosaic_0001>
module attributes {stable_mosaic.version = 11 : i64} {
  func.func @kernel(%arg0: i32, %arg1: memref<20x8xf32, #tpu.memory_space<vmem>>, %arg2: memref<24x32xf32, #tpu.memory_space<vmem>>, %arg3: memref<1x32xf32, #tpu.memory_space<vmem>>, %arg4: memref<32x16xf32, #tpu.memory_space<vmem>>, %arg5: memref<1x16xf32, #tpu.memory_space<vmem>>, %arg6: memref<1x16xf32, #tpu.memory_space<vmem>>, %arg7: memref<1x1xf32, #tpu.memory_space<vmem>>, %arg8: memref<1x16xf32, #tpu.memory_space<vmem>>) attributes {dimension_semantics = [#tpu.dimension_semantics<parallel>], iteration_bounds = array<i64: 1>, scalar_prefetch = 0 : i64, scratch_operands = 0 : i64, tpu.core_type = #tpu.core_type<tc>, window_params = [{pipeline_mode = #tpu.pipeline_mode<synchronous>, transform_indices = @transform_0, window_bounds = array<i64: 20, 8>}, {pipeline_mode = #tpu.pipeline_mode<synchronous>, transform_indices = @transform_1, window_bounds = array<i64: 24, 32>}, {pipeline_mode = #tpu.pipeline_mode<synchronous>, transform_indices = @transform_2, window_bounds = array<i64: 1, 32>}, {pipeline_mode = #tpu.pipeline_mode<synchronous>, transform_indices = @transform_3, window_bounds = array<i64: 32, 16>}, {pipeline_mode = #tpu.pipeline_mode<synchronous>, transform_indices = @transform_4, window_bounds = array<i64: 1, 16>}, {pipeline_mode = #tpu.pipeline_mode<synchronous>, transform_indices = @transform_5, window_bounds = array<i64: 1, 16>}, {pipeline_mode = #tpu.pipeline_mode<synchronous>, transform_indices = @transform_6, window_bounds = array<i64: 1, 1>}, {transform_indices = @transform_7, window_bounds = array<i64: 1, 16>}]} {
    %c16_i32 = arith.constant 16 : i32
    %0 = arith.muli %arg0, %c16_i32 : i32
    %1 = tpu.assume_multiple %0, 16 : i32
    %c0_i32 = arith.constant 0 : i32
    %2 = arith.addi %1, %c0_i32 : i32
    %3 = arith.index_cast %2 : i32 to index
    %c0 = arith.constant 0 : index
    %4 = vector.load %arg1[%3, %c0] : memref<20x8xf32, #tpu.memory_space<vmem>>, vector<16x8xf32>
    %c2_i32 = arith.constant 2 : i32
    %5 = arith.addi %1, %c2_i32 : i32
    %6 = arith.index_cast %5 : i32 to index
    %c0_0 = arith.constant 0 : index
    %7 = vector.load %arg1[%6, %c0_0] : memref<20x8xf32, #tpu.memory_space<vmem>>, vector<16x8xf32>
    %c4_i32 = arith.constant 4 : i32
    %8 = arith.addi %1, %c4_i32 : i32
    %9 = arith.index_cast %8 : i32 to index
    %c0_1 = arith.constant 0 : index
    %10 = vector.load %arg1[%9, %c0_1] : memref<20x8xf32, #tpu.memory_space<vmem>>, vector<16x8xf32>
    %11 = tpu.concatenate %4, %7, %10 in 1 : vector<16x8xf32>, vector<16x8xf32>, vector<16x8xf32> -> vector<16x24xf32>
    %c0_2 = arith.constant 0 : index
    %c0_3 = arith.constant 0 : index
    %12 = vector.load %arg2[%c0_2, %c0_3] : memref<24x32xf32, #tpu.memory_space<vmem>>, vector<24x32xf32>
    %c0_4 = arith.constant 0 : index
    %c0_5 = arith.constant 0 : index
    %13 = vector.load %arg3[%c0_4, %c0_5] : memref<1x32xf32, #tpu.memory_space<vmem>>, vector<1x32xf32>
    %cst = arith.constant dense<0.000000e+00> : vector<16x32xf32>
    %14 = tpu.matmul %11, %12, %cst {dimension_numbers = #tpu.dot_dimension_numbers<[1], [0], [0], [1], [0, 0, 1, 1], [], []>} : vector<16x24xf32>, vector<24x32xf32>, vector<16x32xf32> -> vector<16x32xf32>
    %15 = vector.broadcast %13 : vector<1x32xf32> to vector<16x32xf32>
    %16 = arith.addf %14, %15 : vector<16x32xf32>
    %cst_6 = arith.constant 0.000000e+00 : f32
    %17 = vector.broadcast %cst_6 : f32 to vector<16x32xf32>
    %18 = arith.maximumf %16, %17 : vector<16x32xf32>
    %c0_7 = arith.constant 0 : index
    %c0_8 = arith.constant 0 : index
    %19 = vector.load %arg4[%c0_7, %c0_8] : memref<32x16xf32, #tpu.memory_space<vmem>>, vector<32x16xf32>
    %c0_9 = arith.constant 0 : index
    %c0_10 = arith.constant 0 : index
    %20 = vector.load %arg5[%c0_9, %c0_10] : memref<1x16xf32, #tpu.memory_space<vmem>>, vector<1x16xf32>
    %cst_11 = arith.constant dense<0.000000e+00> : vector<16x16xf32>
    %21 = tpu.matmul %18, %19, %cst_11 {dimension_numbers = #tpu.dot_dimension_numbers<[1], [0], [0], [1], [0, 0, 1, 1], [], []>} : vector<16x32xf32>, vector<32x16xf32>, vector<16x16xf32> -> vector<16x16xf32>
    %22 = vector.broadcast %20 : vector<1x16xf32> to vector<16x16xf32>
    %23 = arith.addf %21, %22 : vector<16x16xf32>
    %cst_12 = arith.constant 0.000000e+00 : f32
    %24 = vector.broadcast %cst_12 : f32 to vector<16x16xf32>
    %25 = arith.maximumf %23, %24 : vector<16x16xf32>
    %c0_13 = arith.constant 0 : index
    %c0_14 = arith.constant 0 : index
    %26 = vector.load %arg6[%c0_13, %c0_14] : memref<1x16xf32, #tpu.memory_space<vmem>>, vector<1x16xf32>
    %c0_15 = arith.constant 0 : index
    %c0_16 = arith.constant 0 : index
    %27 = vector.load %arg7[%c0_15, %c0_16] : memref<1x1xf32, #tpu.memory_space<vmem>>, vector<1x1xf32>
    %28 = vector.broadcast %26 : vector<1x16xf32> to vector<16x16xf32>
    %29 = arith.mulf %25, %28 : vector<16x16xf32>
    %cst_17 = arith.constant dense<0.000000e+00> : vector<16xf32>
    %30 = vector.multi_reduction <add>, %29, %cst_17 [1] : vector<16x16xf32> to vector<16xf32>
    %31 = vector.shape_cast %30 : vector<16xf32> to vector<16x1xf32>
    %32 = vector.broadcast %27 : vector<1x1xf32> to vector<16x1xf32>
    %33 = arith.addf %31, %32 : vector<16x1xf32>
    %34 = arith.negf %33 : vector<16x1xf32>
    %35 = math.exp %34 : vector<16x1xf32>
    %cst_18 = arith.constant 1.000000e+00 : f32
    %36 = vector.broadcast %cst_18 : f32 to vector<16x1xf32>
    %37 = arith.addf %36, %35 : vector<16x1xf32>
    %38 = arith.divf %36, %37 : vector<16x1xf32>
    %39 = tpu.transpose %38, [1, 0] : vector<16x1xf32> -> vector<1x16xf32>
    %c0_19 = arith.constant 0 : index
    %c0_20 = arith.constant 0 : index
    %40 = vector.load %arg8[%c0_19, %c0_20] : memref<1x16xf32, #tpu.memory_space<vmem>>, vector<1x16xf32>
    tpu.vector_store %arg8[%c0_19, %c0_20], %39 {strides = array<i32>} : memref<1x16xf32, #tpu.memory_space<vmem>>, vector<1x16xf32>,
    return
  }
  func.func @transform_0(%arg0: i32) -> (i32, i32) {
    %c0_i32 = arith.constant 0 : i32
    %c0_i32_0 = arith.constant 0 : i32
    %c0_i32_1 = arith.constant 0 : i32
    return %c0_i32, %c0_i32_0 : i32, i32
  }
  func.func @transform_1(%arg0: i32) -> (i32, i32) {
    %c0_i32 = arith.constant 0 : i32
    %c0_i32_0 = arith.constant 0 : i32
    %c0_i32_1 = arith.constant 0 : i32
    return %c0_i32, %c0_i32_0 : i32, i32
  }
  func.func @transform_2(%arg0: i32) -> (i32, i32) {
    %c0_i32 = arith.constant 0 : i32
    %c0_i32_0 = arith.constant 0 : i32
    %c0_i32_1 = arith.constant 0 : i32
    return %c0_i32, %c0_i32_0 : i32, i32
  }
  func.func @transform_3(%arg0: i32) -> (i32, i32) {
    %c0_i32 = arith.constant 0 : i32
    %c0_i32_0 = arith.constant 0 : i32
    %c0_i32_1 = arith.constant 0 : i32
    return %c0_i32, %c0_i32_0 : i32, i32
  }
  func.func @transform_4(%arg0: i32) -> (i32, i32) {
    %c0_i32 = arith.constant 0 : i32
    %c0_i32_0 = arith.constant 0 : i32
    %c0_i32_1 = arith.constant 0 : i32
    return %c0_i32, %c0_i32_0 : i32, i32
  }
  func.func @transform_5(%arg0: i32) -> (i32, i32) {
    %c0_i32 = arith.constant 0 : i32
    %c0_i32_0 = arith.constant 0 : i32
    %c0_i32_1 = arith.constant 0 : i32
    return %c0_i32, %c0_i32_0 : i32, i32
  }
  func.func @transform_6(%arg0: i32) -> (i32, i32) {
    %c0_i32 = arith.constant 0 : i32
    %c0_i32_0 = arith.constant 0 : i32
    %c0_i32_1 = arith.constant 0 : i32
    return %c0_i32, %c0_i32_0 : i32, i32
  }
  func.func @transform_7(%arg0: i32) -> (i32, i32) {
    %c0_i32 = arith.constant 0 : i32
    %c0_i32_0 = arith.constant 0 : i32
    return %c0_i32, %arg0 : i32, i32
  }
}

</mosaic_0001>

<bundles_post_ra>
// kernel: tpu_custom_call.1
= control target key start
LH: loop header
LB: loop body
LE: loop exit
PB: predicated region body
PF: predicated region fallthrough
CT: control target
= control target key end

     0   :  { %s518_s0 = inlined_call_operand.vmem [shape: f32[20,8], index: 0, kind: input, shape index: {}]   ;;  %s519_s1 = inlined_call_operand.vmem [shape: f32[24,32], index: 1, kind: input, shape index: {}]   ;;  %s520_s2 = inlined_call_operand.vmem [shape: f32[1,32], index: 2, kind: input, shape index: {}]   ;;  %s521_s3 = inlined_call_operand.vmem [shape: f32[32,16], index: 3, kind: input, shape index: {}]   ;;  %s522_s4 = inlined_call_operand.vmem [shape: f32[1,16], index: 4, kind: input, shape index: {}]   ;;  %s523_s5 = inlined_call_operand.vmem [shape: f32[1,16], index: 5, kind: input, shape index: {}]   ;;  %s524_s6 = inlined_call_operand.<no memory space> [shape: f32[1,1], index: 6, kind: input, shape index: {}]   ;;  %s525_s7 = inlined_call_operand.hbm [shape: f32[1,16], index: 7, kind: output, shape index: {}]  }
   0x1   :  { %v12_v0 = vstv %s524_s6 }
   0x2   :  { %13 = vst [vmem:[#allocation2] sm:$0x1] %v12_v0 }
   0x3   :  { %v338_v1 = vld [vmem:[%s518_s0 + $0x2] sm:$0xff]  ;;  %s417_s30 = smov 8   ;;  %s418_s8 = smov 16   ;;  %v339_v3 = vld [vmem:[%s518_s0 + $0xa] sm:$0xff] }
   0x4   :  { %v340_v2 = vld [vmem:[%s518_s0 + $0x4] sm:$0xff]  ;;  %43 = vrot.lane.b32.xlu0 %v338_v1, %s417_s30  ;;  %v341_v4 = vld [vmem:[%s518_s0 + $0xc] sm:$0xff] }
   0x5   :  { %51 = vrot.lane.b32.xlu1 %v340_v2, %s418_s8  ;;  %v65_v5 = vld [vmem:[%s519_s1 + $0x10] sm:$0xff]  ;;  %v64_v6 = vld [vmem:[%s519_s1 + $0x8] sm:$0xff] }
   0x6   :  { %363 = vmatprep.subr.mxu0 %v65_v5 }
   0x7   :  { %14 = vsyncpa [#allocation4], 0  ;;  %364 = vmatpush3.msra.mxu0 %v65_v5  ;;  %v63_v7 = vld [vmem:[%s519_s1] sm:$0xff]  ;;  %vm57_vm0 = vcmask 64512   ;;  %vm60_vm1 = vcmask 130048   ;;  %vm73_vm2 = vcmask 195584  }
   0x8   :  { %45 = vrot.lane.b32.xlu0 %v339_v3, %s417_s30  ;;  %365 = vmatprep.subr.mxu0 %v64_v6  ;;  %v31_v8 = vld [vmem:[%s518_s0] sm:$0xff]  ;;  %v32_v13 = vld [vmem:[%s518_s0 + $0x8] sm:$0xff]  ;;  %v160_v18 = vld [vmem:[%s521_s3 + $0x18] sm:$0xff]  ;;  %vm168_vm3 = vcmask 261120   ;;  %vm320_vm4 = vcmask 122880  }
   0x9   :  { %53 = vrot.lane.b32.xlu1 %v341_v4, %s418_s8  ;;  %366 = vmatpush3.msra.mxu0 %v64_v6  ;;  %v159_v19 = vld [vmem:[%s521_s3 + $0x10] sm:$0xff]  ;;  %v158_v20 = vld [vmem:[%s521_s3 + $0x8] sm:$0xff]  ;;  %v157_v21 = vld [vmem:[%s521_s3] sm:$0xff] }
   0xa   :  { %367 = vmatprep.subr.mxu0 %v63_v7  ;;  %372 = vmatprep.subr.mxu1 %v160_v18  ;;  %v342_v22 = vld [vmem:[%s520_s2] ss:$0 sm:$0xff]  ;;  %s419_s2 = smov [#allocation3]  }
   0xb   :  { %368 = vmatpush3.msra.mxu0 %v63_v7  ;;  %373 = vmatpush3.msra.mxu1 %v160_v18  ;;  %v345_v29 = vld [vmem:[%s522_s4] ss:$0 sm:$0xff]  ;;  %s328_s4 = sshll.u32 %s419_s2, 4  ;;  %s329_s4 = int_to_ptr.vmem [resolvable:$true] %s328_s4 }
   0xc   :  { %374 = vmatprep.subr.mxu1 %v159_v19  ;;  %v348_v33 = vld [vmem:[%s523_s5] ss:$0 sm:$0xff]  ;;  %s395_s5 = scalar_lea.vmem %s329_s4, 16  ;;  %s399_s10 = scalar_lea.vmem %s329_s4, 32 }
   0xd   :  { %375 = vmatpush3.msra.mxu1 %v159_v19  ;;  %v349_v41 = vld [vmem:[#allocation2] ss:$0 sm:$0xff]  ;;  %p396_p0 = scmp.ne.s32.totalorder %s329_s4, %s395_s5  ;;  %p400_p1 = scmp.lt.s32.totalorder %s329_s4, %s329_s4 }
   0xe   :  { %376 = vmatprep.subr.mxu1 %v158_v20  ;;  %p401_p2 = scmp.lt.s32.totalorder %s399_s10, %s395_s5 }
   0xf   :  { %377 = vmatpush3.msra.mxu1 %v158_v20 }
  0x10   :  { %378 = vmatprep.subr.mxu1 %v157_v21  ;;  %p402_p3 = por %p401_p2, %p400_p1 }
  0x11   :  { %379 = vmatpush3.msra.mxu1 %v157_v21 }
  0x12   :  { %p403_p4 = pnand %p402_p3, %p396_p0 }
  0x76   :  { %v44_v9 = vpop.permute.xlu0 %43 }
  0x77   :  { %v52_v10 = vpop.permute.xlu1 %51  ;;  %v58_v11 = vsel %vm57_vm0, %v31_v8, %v44_v9 }
  0x78   :  { %v61_v12 = vsel %vm60_vm1, %v58_v11, %v52_v10 }
  0x79   :  { %369 = vmatprep.mubr.msk.f32.mxu0 %vm73_vm2, %v61_v12 }
  0x7a   :  { %v46_v14 = vpop.permute.xlu0 %45 }
  0x7b   :  { %v54_v15 = vpop.permute.xlu1 %53  ;;  %v59_v16 = vsel %vm57_vm0, %v32_v13, %v46_v14 }
  0x7c   :  { %v62_v17 = vsel %vm60_vm1, %v59_v16, %v54_v15 }
  0x7d   :  { %370 = vmatmul.mubr.msk.f32.vlgmr.msra.gmra.mxu0 %vm73_vm2, %v62_v17 }
 0x13d   :  { %v371_v23 = vpop.f32.mrf.mxu0 }
 0x13e   :  { %v152_v24 = vadd.f32 %v371_v23, %v342_v22 }
 0x13f   :  { %v146_v25 = vpop.f32.mrf.mxu0 }
 0x140   :  { %v147_v26 = vadd.f32 %v342_v22, %v146_v25  ;;  %v156_v28 = vmax.f32 %v152_v24, 0.0 }
 0x142   :  { %v155_v27 = vmax.f32 %v147_v26, 0.0 }
 0x144   :  { %380 = vmatprep.mubr.msk.f32.mxu1 %vm168_vm3, %v155_v27 }
 0x145   :  { %381 = vmatmul.mubr.msk.f32.vlgmr.msra.gmra.mxu1 %vm168_vm3, %v156_v28 }
 0x205   :  { %v382_v30 = vpop.f32.mrf.mxu1 }
 0x206   :  { %v247_v31 = vadd.f32 %v382_v30, %v345_v29 }
 0x207   :  { %v241_v32 = vpop.f32.mrf.mxu1 }
 0x208   :  { %v251_v34 = vmax.f32 %v247_v31, 0.0  ;;  %v242_v35 = vadd.f32 %v345_v29, %v241_v32 }
 0x20a   :  { %v250_v36 = vmax.f32 %v242_v35, 0.0  ;;  %v261_v37 = vmul.f32 %v348_v33, %v251_v34 }
 0x20c   :  { %v265_v38 = vsel %vm60_vm1, %v261_v37, 0.0  ;;  %v260_v39 = vmul.f32 %v348_v33, %v250_v36 }
 0x20d   :  { %266 = vadd.xlane.f32.xlu1 %v265_v38 }
 0x20e   :  { %v262_v40 = vsel %vm60_vm1, %v260_v39, 0.0 }
 0x20f   :  { %263 = vadd.xlane.f32.xlu0 %v262_v40 }
 0x296   :  { %v267_v42 = vpop.xlane.xlu1 %266 }
 0x297   :  { %v275_v43 = vadd.f32 %v349_v41, %v267_v42 }
 0x298   :  { %v264_v44 = vpop.xlane.xlu0 %263 }
 0x299   :  { %v351_v45 = vmul.f32 -1.442695, %v275_v43  ;;  %v274_v46 = vadd.f32 %v349_v41, %v264_v44 }
 0x29b   :  { %v350_v47 = vmul.f32 -1.442695, %v274_v46  ;;  %387 = vpow2.f32 %v351_v45 }
 0x29d   :  { %389 = vpow2.f32 %v350_v47 }
 0x2a8   :  { %v388_v48 = vpop.eup %387 }
 0x2a9   :  { %v283_v51 = vadd.f32 1.0, %v388_v48 }
 0x2aa   :  { %v390_v49 = vpop.eup %389 }
 0x2ab   :  { %v282_v50 = vadd.f32 1.0, %v390_v49 }
 0x2ad   :  { %391 = vrcp.f32 %v282_v50 }
 0x2ae   :  { %393 = vrcp.f32 %v283_v51 }
 0x2ba   :  { %v392_v52 = vpop.eup %391 }
 0x2bb   :  { %288 = vxpose.xlu0.b32.start [1/2] (short) (narrow) %v392_v52, 8  ;;  %v394_v53 = vpop.eup %393 }
 0x2bf   :  { %289 = vxpose.xlu0.b32.end [2/2] (short) (narrow) %v394_v53, 8 }
 0x337   :  { %v304_v54 = vpop.trf.xlu0 }
 0x338   :  { %321 = vst.msk [vmem:[#allocation3] sm:$0x1] %vm320_vm4, %v304_v54 }
 0x339   :  { %406 = shalt.err (!%p403_p4)
}
 0x33a   :  { %331 = dma.vmem_to_hbm [thread:$0]  %s329_s4, 16, %s525_s7, [#allocation4]  }
 0x33b   :  { %415 = dma.done.wait [#allocation4], 16  }
 0x33c   :  { %416 = vsyncadd [#allocation4], 4294967280 }
 0x33d   :  { %335 = vsyncpa [#allocation4], 1 }

</bundles_post_ra>
